<compile_context>
chip_gen: v6e
topology: v6e:2x2x1
jax: 0.10.0
libtpu: 0.0.40
codegen_flags: <defaults>
</compile_context>

<pallas_src>
import functools

import jax
import jax.numpy as jnp
from jax.experimental import pallas as pl
from jax.experimental.pallas import tpu as pltpu

LANE = 128
SUBLANE = 8
_SEQ_CHUNK = 8  # tokens folded into counts per step (bounds the 3-D one-hot)


def _round_up(x, m):
    return ((x + m - 1) // m) * m


def bow_kernel(tiles_ref, nact_ref, idx_ref, emb_ref, w_ref, b_ref,
               out_ref, acc_ref, *, inv_seq_len, count_matmul_dtype):
    # tiles_ref : (max_active,) int32 SMEM  active vocab-tile indices (padded)
    # nact_ref  : (1,)          int32 SMEM  number of valid entries in tiles_ref
    # idx_ref   : (B, S)        int32 VMEM  token ids (resident)
    # emb_ref   : (TV, Hp)      f32/bf16    current vocab tile of the table
    # w_ref     : (Hp, Cp)      f32/bf16    fc weight (torch weight.T), resident
    # b_ref     : (1, Cp)       f32         fc bias, resident
    # out_ref   : (B, Cp)       f32         output (written on the last step)
    # acc_ref   : (B, Hp)       f32 scratch accumulator for the embedding sum
    k = pl.program_id(0)
    nk = pl.num_programs(0)

    @pl.when(k == 0)
    def _init():
        acc_ref[...] = jnp.zeros_like(acc_ref)

    # Only the first n_active grid steps carry real vocab tiles; padding slots
    # (index_map points them at tile 0) skip all compute.
    @pl.when(k < nact_ref[0])
    def _accumulate():
        ids = idx_ref[...]                               # (B, S) int32
        b_sz, s_len = ids.shape
        tv = emb_ref.shape[0]
        base = tiles_ref[k] * tv                          # first vocab id of tile

        iota = base + jax.lax.broadcasted_iota(jnp.int32, (1, 1, tv), 2)

        # Bag-of-words counts restricted to this vocab tile, built in S-chunks
        # so the 3-D one-hot intermediate is at most (B, 8, TV).
        counts = jnp.zeros((b_sz, tv), jnp.float32)
        for s0 in range(0, s_len, _SEQ_CHUNK):
            chunk = ids[:, s0:s0 + _SEQ_CHUNK]            # static slice
            onehot = (chunk[:, :, None] == iota).astype(jnp.float32)
            counts = counts + jnp.sum(onehot, axis=1)     # (B, TV)

        # Partial embedding sum for this tile; f32 accumulation on the MXU.
        acc_ref[...] += jnp.dot(
            counts.astype(count_matmul_dtype),
            emb_ref[...].astype(count_matmul_dtype),
            preferred_element_type=jnp.float32)

    @pl.when(k == nk - 1)
    def _finish():
        mean_emb = acc_ref[...] * inv_seq_len             # (B, Hp), f32
        out_ref[...] = (
            jnp.dot(mean_emb.astype(w_ref.dtype), w_ref[...],
                    preferred_element_type=jnp.float32)
            + b_ref[...])


def prepare_params(emb_table, w, b, *, vocab_tile=512,
                   operand_dtype=jnp.bfloat16, vmem_budget_bytes=24 << 20):
    """One-time pad/cast of the parameters.  Keep this OUT of the hot path."""
    Vrows, H = emb_table.shape
    C = w.shape[1]
    Hp = _round_up(H, LANE)
    Cp = _round_up(C, LANE)
    itemsize = jnp.dtype(operand_dtype).itemsize

    # Small tables: keep the whole (padded) table resident -> grid of 1.
    vocab_tile = min(_round_up(vocab_tile, SUBLANE), _round_up(Vrows, SUBLANE))
    # Fit double-buffered emb tile + resident fc weight under the VMEM budget
    # (v7x: 64 MiB physical / 32 MiB default scoped VMEM; v5e/v6e: 128 MiB).
    resident = Hp * Cp * itemsize
    while (vocab_tile > SUBLANE
           and 2 * vocab_tile * Hp * itemsize + resident > vmem_budget_bytes):
        vocab_tile = _round_up(vocab_tile // 2, SUBLANE)

    Vpad = _round_up(Vrows, vocab_tile)
    n_tiles = Vpad // vocab_tile

    emb_p = jnp.zeros((Vpad, Hp), operand_dtype).at[:Vrows, :H].set(
        emb_table.astype(operand_dtype))
    w_p = jnp.zeros((Hp, Cp), operand_dtype).at[:H, :C].set(
        w.astype(operand_dtype))
    b_p = jnp.zeros((1, Cp), jnp.float32).at[0, :C].set(b.astype(jnp.float32))
    return dict(emb_p=emb_p, w_p=w_p, b_p=b_p,
                vocab_tile=vocab_tile, n_tiles=n_tiles, n_classes=C)


def bow_forward(x, params):
    """x: (B, S) int token ids; params from prepare_params()."""
    ids = x.astype(jnp.int32)
    B, S = ids.shape
    emb_p, w_p, b_p = params["emb_p"], params["w_p"], params["b_p"]
    vocab_tile, n_tiles, C = (params["vocab_tile"], params["n_tiles"],
                              params["n_classes"])
    Vpad, Hp = emb_p.shape
    Cp = w_p.shape[1]

    # Scalar prefetch: the (few) vocab tiles actually referenced by the batch.
    max_active = min(n_tiles, B * S)
    tile_of_tok = jnp.clip(ids // vocab_tile, 0, n_tiles - 1).reshape(-1)
    uniq = jnp.unique(tile_of_tok, size=max_active, fill_value=n_tiles)
    n_active = jnp.sum(uniq < n_tiles).astype(jnp.int32).reshape(1)
    tiles = jnp.where(uniq < n_tiles, uniq, 0).astype(jnp.int32)

    operand_dtype = emb_p.dtype
    # bf16 counts are integer-exact only up to 256; keep f32 counts for long S.
    count_matmul_dtype = operand_dtype if S <= 256 else jnp.float32

    kernel = functools.partial(bow_kernel, inv_seq_len=1.0 / float(S),
                               count_matmul_dtype=count_matmul_dtype)

    itemsize = jnp.dtype(operand_dtype).itemsize
    cost = pl.CostEstimate(
        flops=2 * B * max_active * vocab_tile * Hp + 2 * B * Hp * Cp,
        transcendentals=0,
        bytes_accessed=(max_active * vocab_tile * Hp + Hp * Cp) * itemsize
        + ids.size * 4 + Cp * 4 + B * Cp * 4)

    out_p = pl.pallas_call(
        kernel,
        out_shape=jax.ShapeDtypeStruct((B, Cp), jnp.float32),
        grid_spec=pltpu.PrefetchScalarGridSpec(
            num_scalar_prefetch=2,
            grid=(max_active,),
            in_specs=[
                # ids: resident across all tiles (full-array block).
                pl.BlockSpec((B, S), lambda k, t, n: (0, 0)),
                # embedding table: only the active tiles are streamed.
                pl.BlockSpec((vocab_tile, Hp), lambda k, t, n: (t[k], 0)),
                # fc weight / bias: resident.
                pl.BlockSpec((Hp, Cp), lambda k, t, n: (0, 0)),
                pl.BlockSpec((1, Cp), lambda k, t, n: (0, 0)),
            ],
            out_specs=pl.BlockSpec((B, Cp), lambda k, t, n: (0, 0)),
            scratch_shapes=[pltpu.VMEM((B, Hp), jnp.float32)],
        ),
        compiler_params=pltpu.CompilerParams(
            dimension_semantics=("arbitrary",),   # vocab axis is a reduction
        ),
        cost_estimate=cost,
    )(tiles, n_active, ids, emb_p, w_p, b_p)

    return out_p[:, :C]


def bow_classifier(x, emb_table, w, b, **prep_kwargs):
    """Convenience one-shot wrapper (prepare + forward)."""
    return bow_forward(x, prepare_params(emb_table, w, b, **prep_kwargs))


if __name__ == "__main__":
    # Small shapes consistent with the module's forward; vocab large enough
    # that the active-tile gather path (multiple vocab tiles) is exercised.
    vocab_len = 5000
    hidden_dim = 32
    n_classes = 4
    batch = 2
    seq = 8

    key = jax.random.PRNGKey(0)
    k_emb, k_w, k_b, k_x = jax.random.split(key, 4)

    # Row `vocab_len` is the padding row (zeros), matching
    # nn.Embedding(..., padding_idx=vocab_len).
    emb_table = jax.random.normal(k_emb, (vocab_len + 1, hidden_dim), jnp.float32)
    emb_table = emb_table.at[vocab_len].set(0.0)
    w = jax.random.normal(k_w, (hidden_dim, n_classes), jnp.float32) * 0.1
    b = jax.random.normal(k_b, (n_classes,), jnp.float32) * 0.1

    # Token ids in [0, vocab_len] (inclusive, so the padding index can appear).
    x = jax.random.randint(k_x, (batch, seq), 0, vocab_len + 1, jnp.int32)

    # Pure-JAX reference (identical to the PyTorch forward).
    ref = jnp.mean(emb_table[x], axis=1) @ w + b

    # f32 operands: exact check (parameters prepared once, out of the hot path).
    params_f32 = prepare_params(emb_table, w, b, operand_dtype=jnp.float32)
    out_f32 = jax.block_until_ready(bow_forward(x, params_f32))
    assert out_f32.shape == (batch, n_classes)
    assert jnp.allclose(out_f32, ref, atol=1e-5, rtol=1e-5), (out_f32, ref)

    # bf16 streamed table / fc weight (new default): f32 accumulation preserved.
    params_bf16 = prepare_params(emb_table, w, b)  # operand_dtype=bfloat16
    out_bf16 = jax.block_until_ready(bow_forward(x, params_bf16))
    assert jnp.allclose(out_bf16, ref, atol=3e-2, rtol=3e-2), (out_bf16, ref)

    print("KERNEL_OK")
</pallas_src>

<mosaic_0001>
module attributes {stable_mosaic.version = 11 : i64} {
  func.func @bow_kernel(%arg0: i32, %arg1: memref<10xi32, #tpu.memory_space<smem>>, %arg2: memref<1xi32, #tpu.memory_space<smem>>, %arg3: memref<2x8xi32, #tpu.memory_space<vmem>>, %arg4: memref<512x128xf32, #tpu.memory_space<vmem>>, %arg5: memref<128x128xf32, #tpu.memory_space<vmem>>, %arg6: memref<1x128xf32, #tpu.memory_space<vmem>>, %arg7: memref<2x128xf32, #tpu.memory_space<vmem>>, %arg8: memref<2x128xf32, #tpu.memory_space<vmem>>) attributes {dimension_semantics = [#tpu.dimension_semantics<arbitrary>], iteration_bounds = array<i64: 10>, scalar_prefetch = 2 : i64, scratch_operands = 1 : i64, tpu.core_type = #tpu.core_type<tc>, window_params = [{pipeline_mode = #tpu.pipeline_mode<synchronous>, transform_indices = @transform_0, window_bounds = array<i64: 2, 8>}, {transform_indices = @transform_1, window_bounds = array<i64: 512, 128>}, {pipeline_mode = #tpu.pipeline_mode<synchronous>, transform_indices = @transform_2, window_bounds = array<i64: 128, 128>}, {pipeline_mode = #tpu.pipeline_mode<synchronous>, transform_indices = @transform_3, window_bounds = array<i64: 1, 128>}, {pipeline_mode = #tpu.pipeline_mode<synchronous>, transform_indices = @transform_4, window_bounds = array<i64: 2, 128>}]} {
    %c0_i32 = arith.constant 0 : i32
    %0 = arith.cmpi eq, %arg0, %c0_i32 : i32
    %1 = arith.extui %0 : i1 to i32
    %c0_i32_0 = arith.constant 0 : i32
    %2 = arith.cmpi ne, %1, %c0_i32_0 : i32
    scf.if %2 {
      %cst = arith.constant 0.000000e+00 : f32
      %10 = vector.broadcast %cst : f32 to vector<2x128xf32>
      %c0_3 = arith.constant 0 : index
      %c0_4 = arith.constant 0 : index
      %11 = vector.load %arg8[%c0_3, %c0_4] : memref<2x128xf32, #tpu.memory_space<vmem>>, vector<2x128xf32>
      tpu.vector_store %arg8[%c0_3, %c0_4], %10 {strides = array<i32>} : memref<2x128xf32, #tpu.memory_space<vmem>>, vector<2x128xf32>,
    } else {
    }
    %c0 = arith.constant 0 : index
    %3 = memref.load %arg2[%c0] : memref<1xi32, #tpu.memory_space<smem>>
    %4 = arith.cmpi slt, %arg0, %3 : i32
    %5 = arith.extui %4 : i1 to i32
    %c0_i32_1 = arith.constant 0 : i32
    %6 = arith.cmpi ne, %5, %c0_i32_1 : i32
    scf.if %6 {
      %c0_3 = arith.constant 0 : index
      %c0_4 = arith.constant 0 : index
      %10 = vector.load %arg3[%c0_3, %c0_4] : memref<2x8xi32, #tpu.memory_space<vmem>>, vector<2x8xi32>
      %11 = arith.index_cast %arg0 : i32 to index
      %12 = memref.load %arg1[%11] : memref<10xi32, #tpu.memory_space<smem>>
      %c512_i32 = arith.constant 512 : i32
      %13 = arith.muli %12, %c512_i32 : i32
      %14 = tpu.iota {dimensions = array<i32: 2>} : vector<1x1x512xi32>
      %15 = vector.broadcast %13 : i32 to vector<1x1x512xi32>
      %16 = arith.addi %15, %14 : vector<1x1x512xi32>
      %cst = arith.constant 0.000000e+00 : f32
      %17 = vector.broadcast %cst : f32 to vector<2x512xf32>
      %18 = vector.shape_cast %10 : vector<2x8xi32> to vector<2x8x1xi32>
      %19 = vector.broadcast %18 : vector<2x8x1xi32> to vector<2x8x512xi32>
      %20 = vector.broadcast %16 : vector<1x1x512xi32> to vector<2x8x512xi32>
      %21 = arith.cmpi eq, %19, %20 : vector<2x8x512xi32>
      %22 = arith.extui %21 : vector<2x8x512xi1> to vector<2x8x512xi32>
      %23 = arith.sitofp %22 : vector<2x8x512xi32> to vector<2x8x512xf32>
      %cst_5 = arith.constant dense<0.000000e+00> : vector<2x512xf32>
      %24 = vector.multi_reduction <add>, %23, %cst_5 [1] : vector<2x8x512xf32> to vector<2x512xf32>
      %25 = arith.addf %17, %24 : vector<2x512xf32>
      %c0_6 = arith.constant 0 : index
      %c0_7 = arith.constant 0 : index
      %26 = vector.load %arg8[%c0_6, %c0_7] : memref<2x128xf32, #tpu.memory_space<vmem>>, vector<2x128xf32>
      %c0_8 = arith.constant 0 : index
      %c0_9 = arith.constant 0 : index
      %27 = vector.load %arg4[%c0_8, %c0_9] : memref<512x128xf32, #tpu.memory_space<vmem>>, vector<512x128xf32>
      %cst_10 = arith.constant dense<0.000000e+00> : vector<2x128xf32>
      %28 = tpu.matmul %25, %27, %cst_10 {dimension_numbers = #tpu.dot_dimension_numbers<[1], [0], [0], [1], [0, 0, 1, 1], [], []>} : vector<2x512xf32>, vector<512x128xf32>, vector<2x128xf32> -> vector<2x128xf32>
      %29 = arith.addf %26, %28 : vector<2x128xf32>
      %c0_11 = arith.constant 0 : index
      %c0_12 = arith.constant 0 : index
      %30 = vector.load %arg8[%c0_11, %c0_12] : memref<2x128xf32, #tpu.memory_space<vmem>>, vector<2x128xf32>
      tpu.vector_store %arg8[%c0_11, %c0_12], %29 {strides = array<i32>} : memref<2x128xf32, #tpu.memory_space<vmem>>, vector<2x128xf32>,
    } else {
    }
    %c9_i32 = arith.constant 9 : i32
    %7 = arith.cmpi eq, %arg0, %c9_i32 : i32
    %8 = arith.extui %7 : i1 to i32
    %c0_i32_2 = arith.constant 0 : i32
    %9 = arith.cmpi ne, %8, %c0_i32_2 : i32
    scf.if %9 {
      %c0_3 = arith.constant 0 : index
      %c0_4 = arith.constant 0 : index
      %10 = vector.load %arg8[%c0_3, %c0_4] : memref<2x128xf32, #tpu.memory_space<vmem>>, vector<2x128xf32>
      %cst = arith.constant 1.250000e-01 : f32
      %11 = vector.broadcast %cst : f32 to vector<2x128xf32>
      %12 = arith.mulf %10, %11 : vector<2x128xf32>
      %c0_5 = arith.constant 0 : index
      %c0_6 = arith.constant 0 : index
      %13 = vector.load %arg5[%c0_5, %c0_6] : memref<128x128xf32, #tpu.memory_space<vmem>>, vector<128x128xf32>
      %cst_7 = arith.constant dense<0.000000e+00> : vector<2x128xf32>
      %14 = tpu.matmul %12, %13, %cst_7 {dimension_numbers = #tpu.dot_dimension_numbers<[1], [0], [0], [1], [0, 0, 1, 1], [], []>} : vector<2x128xf32>, vector<128x128xf32>, vector<2x128xf32> -> vector<2x128xf32>
      %c0_8 = arith.constant 0 : index
      %c0_9 = arith.constant 0 : index
      %15 = vector.load %arg6[%c0_8, %c0_9] : memref<1x128xf32, #tpu.memory_space<vmem>>, vector<1x128xf32>
      %16 = vector.broadcast %15 : vector<1x128xf32> to vector<2x128xf32>
      %17 = arith.addf %14, %16 : vector<2x128xf32>
      %c0_10 = arith.constant 0 : index
      %c0_11 = arith.constant 0 : index
      %18 = vector.load %arg7[%c0_10, %c0_11] : memref<2x128xf32, #tpu.memory_space<vmem>>, vector<2x128xf32>
      tpu.vector_store %arg7[%c0_10, %c0_11], %17 {strides = array<i32>} : memref<2x128xf32, #tpu.memory_space<vmem>>, vector<2x128xf32>,
    } else {
    }
    return
  }
  func.func @transform_0(%arg0: i32, %arg1: memref<10xi32, #tpu.memory_space<smem>>, %arg2: memref<1xi32, #tpu.memory_space<smem>>) -> (i32, i32) {
    %c0_i32 = arith.constant 0 : i32
    %c0_i32_0 = arith.constant 0 : i32
    %c0_i32_1 = arith.constant 0 : i32
    return %c0_i32, %c0_i32_0 : i32, i32
  }
  func.func @transform_1(%arg0: i32, %arg1: memref<10xi32, #tpu.memory_space<smem>>, %arg2: memref<1xi32, #tpu.memory_space<smem>>) -> (i32, i32) {
    %0 = arith.index_cast %arg0 : i32 to index
    %1 = memref.load %arg1[%0] : memref<10xi32, #tpu.memory_space<smem>>
    %c0_i32 = arith.constant 0 : i32
    %c0_i32_0 = arith.constant 0 : i32
    return %1, %c0_i32 : i32, i32
  }
  func.func @transform_2(%arg0: i32, %arg1: memref<10xi32, #tpu.memory_space<smem>>, %arg2: memref<1xi32, #tpu.memory_space<smem>>) -> (i32, i32) {
    %c0_i32 = arith.constant 0 : i32
    %c0_i32_0 = arith.constant 0 : i32
    %c0_i32_1 = arith.constant 0 : i32
    return %c0_i32, %c0_i32_0 : i32, i32
  }
  func.func @transform_3(%arg0: i32, %arg1: memref<10xi32, #tpu.memory_space<smem>>, %arg2: memref<1xi32, #tpu.memory_space<smem>>) -> (i32, i32) {
    %c0_i32 = arith.constant 0 : i32
    %c0_i32_0 = arith.constant 0 : i32
    %c0_i32_1 = arith.constant 0 : i32
    return %c0_i32, %c0_i32_0 : i32, i32
  }
  func.func @transform_4(%arg0: i32, %arg1: memref<10xi32, #tpu.memory_space<smem>>, %arg2: memref<1xi32, #tpu.memory_space<smem>>) -> (i32, i32) {
    %c0_i32 = arith.constant 0 : i32
    %c0_i32_0 = arith.constant 0 : i32
    %c0_i32_1 = arith.constant 0 : i32
    return %c0_i32, %c0_i32_0 : i32, i32
  }
}

</mosaic_0001>

<bundles_post_ra>
// kernel: tpu_custom_call.1
= control target key start
LH: loop header
LB: loop body
LE: loop exit
PB: predicated region body
PF: predicated region fallthrough
CT: control target
= control target key end

     0   :  { %s1219_s21 = smov [#allocation4]   ;;  %s1529_s0 = inlined_call_operand.hbm [shape: s32[10], index: 0, kind: input, shape index: {}]   ;;  %s1530_s1 = inlined_call_operand.<no memory space> [shape: s32[1], index: 1, kind: input, shape index: {}]   ;;  %s1531_s2 = inlined_call_operand.hbm [shape: s32[2,8], index: 2, kind: input, shape index: {}]   ;;  %s1532_s3 = inlined_call_operand.hbm [shape: f32[5120,128], index: 3, kind: input, shape index: {}]   ;;  %s1533_s4 = inlined_call_operand.hbm [shape: f32[128,128], index: 4, kind: input, shape index: {}]   ;;  %s1534_s5 = inlined_call_operand.hbm [shape: f32[1,128], index: 5, kind: input, shape index: {}]   ;;  %s1535_s6 = inlined_call_operand.hbm [shape: f32[2,128], index: 6, kind: output, shape index: {}]  }
   0x1   :  { %12 = dma.hbm_to_smem %s1529_s0, 16, %s1219_s21, [#allocation3] }
   0x2   :  { %13 = sst [smem:[#allocation5]] %s1530_s1 }
   0x3   :  { %1181 = dma.done.wait [#allocation3], 16 }
   0x4   :  { %1182 = vsyncadd [#allocation3], 4294967280 }
   0x5   :  { %15 = sfence }
   0x6   :  { %16 = vsyncpa [#allocation7], 0 }
   0x7   :  { %17 = vsyncpa [#allocation10], 0 }
   0x8   :  { %19 = vsyncpa [#allocation10 + $0x1], 0 }
   0x9   :  { %20 = vsyncpa [#allocation13], 0 }
   0xa   :  { %21 = vsyncpa [#allocation8], 0  ;;  %s1272_s26 = smov 0   ;;  %s1274_s27 = smov 0  }
   0xb   :  { %s1276_s28 = smov 0   ;;  %s1278_s29 = smov 0  }
   0xc LB: > { %s1291_s0 = sadd.s32 1, %s1217_s29   ;;  %s1294_s1 = sadd.s32 4294967295, %s1217_s29   ;;  %s1217_s29 = sphi %s1278_s29, %s1557_s29   ;;  %s1213_s28 = sphi %s1276_s28, %s1556_s28   ;;  %s1209_s27 = sphi %s1274_s27, %s1555_s27   ;;  %s1205_s26 = sphi %s1272_s26, %s1554_s26  }
   0xd   : > { %s52_s30 = sld [smem:[#allocation4 + %s1217_s29]]  ;;  %s57_s8 = sadd.s32 1, %s1213_s28 }
   0xe   : > { %s53_s7 = sld [smem:[#allocation4 + %s1291_s0]]  ;;  %p64_p0 = scmp.ne.s32.totalorder %s1213_s28, %s1209_s27 }
   0xf   : > { %p70_p1 = scmp.ne.s32.totalorder %s1209_s27, %s1205_s26  ;;  %p1536_p2 = scmp.eq.s32.totalorder %s1294_s1, 0 }
  0x10   : > { %p786_p3 = scmp.ge.s32.totalorder %s1217_s29, 1  ;;  %p144_p5 = scmp.lt.s32.totalorder %s1217_s29, 11 }
  0x11   : > { %p1308_p6 = por %p1536_p2, %p70_p1  ;;  %s1220_s12 = smov [#allocation11]  }
  0x12   : > { %p1313_p8 = pnand %p786_p3, %p144_p5  ;;  %s167_s13 = sshll.u32 %s1220_s12, 4  ;;  %s168_s13 = int_to_ptr.vmem [resolvable:$true] %s167_s13 }
  0x13   : > { %s1539_s9 = scalar_select %p1308_p6, 1, 0 }
  0x14   : > { %s1540_s10 = scalar_select %p1313_p8, 1, 0 }
  0x15   : > { %s54_s11 = ssub.s32 %s52_s30, %s53_s7  ;;  %p959_p10 = pneg %p1313_p8 }
  0x16   : > { %p55_p9 = scmp.eq.s32.totalorder %s54_s11, 0  ;;  %s1221_s16 = smov [#allocation6]  }
  0x17   : > { %p1324_p11 = pnand %p959_p10, %p1536_p2  ;;  %s157_s17 = sshll.u32 %s1221_s16, 4  ;;  %s158_s17 = int_to_ptr.vmem [resolvable:$true] %s157_s17 }
  0x18   : > { %s1320_s14 = scalar_select %p55_p9, %s1213_s28, %s57_s8  }
  0x19   : > { %p1037_p12 = pneg %p1324_p11  ;;  %s1046_s18 = scalar_lea.vmem %s168_s13, 2048 }
  0x1a   : > { %p1047_p13 = scmp.ne.s32.totalorder %s168_s13, %s1046_s18  ;;  %p1054_p5 = scmp.lt.s32.totalorder %s168_s13, %s168_s13 }
  0x1b   : > { %p1055_p9 = scmp.lt.s32.totalorder %s1046_s18, %s1046_s18 }
  0x1c   : > { %p1049_p1 = pnand %p1047_p13, %p1037_p12 }
  0x1d   : > { %p1056_p7 = por %p1055_p9, %p1054_p5 }
  0x1e   : > { %p1050_p3 = pneg %p1049_p1 }
  0x20   : > { %p1057_p4 = pnand %p1056_p7, %p1050_p3 }
  0x22   : > { %1060 = shalt.err (!%p1057_p4)
}
  0x23   : > { %s1222_s19 = smov 128   ;;  %s1223_s20 = smov 8  }
  0x24   : > { %965 = dma.hbm_to_vmem [thread:$0]  (!%p1324_p11), %s1533_s4, 2048, %s168_s13, [#allocation10], %s1222_s19, %s1222_s19, %s1223_s20  }
  0x25   : > { %s1072_s23 = scalar_lea.vmem %s158_s17, 32  ;;  %p1080_p4 = scmp.lt.s32.totalorder %s158_s17, %s158_s17 }
  0x26   : > { %p1073_p10 = scmp.ne.s32.totalorder %s158_s17, %s1072_s23  ;;  %p1081_p1 = scmp.lt.s32.totalorder %s1072_s23, %s1072_s23 }
  0x28   : > { %p1075_p13 = pnand %p1073_p10, %p1037_p12  ;;  %p1082_p3 = por %p1081_p1, %p1080_p4 }
  0x2a   : > { %p1076_p7 = pneg %p1075_p13 }
  0x2c   : > { %p1083_p5 = pnand %p1082_p3, %p1076_p7 }
  0x2e   : > { %1086 = shalt.err (!%p1083_p5)
}
  0x2f   : > { %962 = dma.hbm_to_vmem [thread:$0]  (!%p1324_p11), %s1531_s2, 32, %s158_s17, [#allocation7]  }
  0x30   : > { %s1224_s26 = smov [#allocation12]   ;;  %p1542_p9 = scmp.eq.s32.totalorder %s1217_s29, 0 }
  0x31   : > { %s181_s30 = sshll.u32 %s1224_s26, 4  ;;  %s182_s30 = int_to_ptr.vmem [resolvable:$true] %s181_s30 }
  0x32   : > { %p1354_p10 = por %p1542_p9, %p64_p0  ;;  %s1098_s8 = scalar_lea.vmem %s182_s30, 16 }
  0x33   : > { %p1099_p13 = scmp.ne.s32.totalorder %s182_s30, %s1098_s8  ;;  %s1105_s11 = scalar_lea.vmem %s182_s30, 32 }
  0x34   : > { %p1106_p1 = scmp.lt.s32.totalorder %s182_s30, %s182_s30  ;;  %p1107_p3 = scmp.lt.s32.totalorder %s1105_s11, %s1098_s8 }
  0x35   : > { %p1101_p7 = pnand %p1099_p13, %p1037_p12 }
  0x36   : > { %p1108_p5 = por %p1107_p3, %p1106_p1 }
  0x37   : > { %p1102_p4 = pneg %p1101_p7 }
  0x39   : > { %p1109_p2 = pnand %p1108_p5, %p1102_p4 }
  0x3b   : > { %1112 = shalt.err (!%p1109_p2)
}
  0x3c   : > { %968 = dma.hbm_to_vmem [thread:$0]  (!%p1324_p11), %s1534_s5, 16, %s182_s30, [#allocation13]  }
  0x3d   : > { %p978_p0 = scmp.lt.s32.totalorder %s1217_s29, 10  ;;  %s194_s16 = sand.u32 1, %s1213_s28  }
  0x3e   : > { %s791_s17 = sshll.u32 %s194_s16, 9  ;;  %s192_s23 = sand.u32 1, %s1217_s29  }
  0x3f   : > { %p1370_p12 = pnand %p978_p0, %p1354_p10  ;;  %s196_s24 = scalar_lea.vmem [#allocation9], %s791_s17 }
  0x40   : > { %s945_s15 = scalar_select %p1354_p10, [#allocation4], [#allocation15] }
  0x41   : > { %s946_s21 = scalar_select %p1354_p10, %s1217_s29, 0 }
  0x42   : > { %s1559_s15 = smov (!%p978_p0, %s945_s15), [#allocation16]  ;;  %s204_s25 = sshll.u32 %s196_s24, 4  ;;  %s1380_s25 = int_to_ptr.vmem [resolvable:$true] %s204_s25 }
  0x43   : > { %s1561_s21 = smov (!%p978_p0, %s946_s21), 0  ;;  %s1387_s12 = scalar_lea.sflag [#allocation10], %s192_s23 }
  0x44   : > { %s197_s22 = sld [smem:[%s1559_s15 + %s1561_s21]]  ;;  %p1115_p11 = pneg %p1370_p12 }
  0x45   : > { %s1118_s16 = scalar_lea.hbm %s1532_s3, 81920 }
  0x4a   : > { %s816_s26 = sshll.u32 %s197_s22, 13 }
  0x4b   : > { %s1385_s11 = scalar_lea.hbm %s1532_s3, %s816_s26 }
  0x4c   : > { %s1113_s7 = scalar_lea.hbm %s1385_s11, 8192  ;;  %p1119_p13 = scmp.lt.s32.totalorder %s1385_s11, %s1532_s3 }
  0x4d   : > { %p1114_p2 = scmp.ne.s32.totalorder %s1385_s11, %s1113_s7  ;;  %p1120_p7 = scmp.lt.s32.totalorder %s1118_s16, %s1113_s7 }
  0x4f   : > { %p1116_p9 = pnand %p1115_p11, %p1114_p2  ;;  %p1121_p4 = por %p1120_p7, %p1119_p13 }
  0x51   : > { %p1117_p10 = pneg %p1116_p9 }
  0x53   : > { %p1122_p1 = pnand %p1121_p4, %p1117_p10 }
  0x55   : > { %1125 = shalt.err (!%p1122_p1)
}
  0x56   : > { %s1126_s21 = scalar_lea.vmem %s1380_s25, 8192  ;;  %s1225_s22 = smov [#allocation9]  }
  0x57   : > { %p1127_p3 = scmp.ne.s32.totalorder %s1380_s25, %s1126_s21  ;;  %s1131_s23 = sshll.u32 %s1225_s22, 4  ;;  %s1132_s23 = int_to_ptr.vmem [resolvable:$false] %s1131_s23 }
  0x58   : > { %s1133_s24 = scalar_lea.vmem %s1132_s23, 16384  ;;  %p1134_p2 = scmp.lt.s32.totalorder %s1380_s25, %s1132_s23 }
  0x59   : > { %p1129_p5 = pnand %p1127_p3, %p1115_p11  ;;  %p1135_p9 = scmp.lt.s32.totalorder %s1133_s24, %s1126_s21 }
  0x5b   : > { %p1130_p0 = pneg %p1129_p5  ;;  %p1136_p6 = por %p1135_p9, %p1134_p2 }
  0x5d   : > { %p1137_p8 = pnand %p1136_p6, %p1130_p0 }
  0x5f   : > { %1140 = shalt.err (!%p1137_p8)
}
  0x60   : > { %974 = dma.hbm_to_vmem [thread:$0]  (!%p1370_p12), %s1385_s11, 8192, %s1380_s25, %s1387_s12, %s1222_s19, %s1222_s19, %s1223_s20  }
  0x61   : > { %p1545_p11 = scmp.ne.s32.totalorder %s1540_s10, 0 }
  0x62   : > { %p1546_p10 = scmp.eq.s32.totalorder (!%p1545_p11), %s1294_s1, 0 }
  0x63   : > { %216 = sbr.rel (%p1545_p11) target bundleno = 737 (0x2e1), region = 36 }
  0x68   : > { %1184 = dma.done.wait (%p1546_p10), [#allocation7], 32   ;;  %p1547_p13 = pmov %p1546_p10 }
  0x69   : > { %s222_s18 = sand.u32 1, %s1294_s1   ;;  %s224_s26 = sand.u32 1, %s1209_s27  }
  0x6a   : > { %1186 = vsyncadd (%p1547_p13), [#allocation7], 4294967264  ;;  %s796_s30 = sshll.u32 %s224_s26, 9  ;;  %s223_s8 = scalar_lea.sflag [#allocation10], %s222_s18 }
  0x6b   : > { %s1419_s7 = scalar_lea.vmem [#allocation9], %s796_s30  ;;  %p1548_p6 = scmp.ne.s32.totalorder %s1539_s9, 0 }
  0x6d   : > { %1188 = dma.done.wait (%p1548_p6), %s223_s8, 8192  }
  0x6e   : > { %1190 = vsyncadd (%p1548_p6), %s223_s8, 4294959104  ;;  %p1549_p8 = pmov %p1546_p10 }
  0x70   : > { %1192 = dma.done.wait (%p1549_p8), [#allocation10], 2048   ;;  %p1550_p12 = pmov %p1549_p8 }
  0x71   : > { %p1551_p7 = pmov %p1549_p8 }
  0x72   : > { %1194 = vsyncadd (%p1550_p12), [#allocation10], 4294965248 }
  0x73   : > { %1196 = dma.done.wait (%p1551_p7), [#allocation13], 16   ;;  %p1552_p4 = pmov %p1551_p7 }
  0x74   : > { %p1553_p1 = scmp.ne.s32.totalorder %s1294_s1, 0 }
  0x75   : > { %1198 = vsyncadd (%p1552_p4), [#allocation13], 4294967280 }
  0x76   : > { %259 = sbr.rel (%p1553_p1) target bundleno = 125 (0x7d), region = 56 }
  0x7b   : > { %v1226_v0 = vmov 0.0  }
  0x7c   : > { %260 = vst [vmem:[#allocation2] sm:$0x3] %v1226_v0 }
  0x7d PF: > { %s261_s9 = sld [smem:[#allocation5]] }
  0x83   : > { %p800_p3 = scmp.ge.s32.totalorder %s1294_s1, %s261_s9 }
  0x84   : > { %s267_s10 = sld [smem:[#allocation4 + %s1294_s1]] (!%p800_p3) }
  0x85   : > { %265 = sbr.rel (%p800_p3) target bundleno = 486 (0x1e6), region = 60 }
  0x8a   : > { %v269_v1 = vlaneseq  ;;  %v405_v2 = vld [vmem:[%s1419_s7 + $0xf8] sm:$0xff]  ;;  %v404_v7 = vld [vmem:[%s1419_s7 + $0xf0] sm:$0xff]  ;;  %v403_v12 = vld [vmem:[%s1419_s7 + $0xe8] sm:$0xff]  ;;  %s801_s19 = sshll.u32 %s267_s10, 9  ;;  %vm446_vm8 = vcmask 1041409  }
  0x8b   : > { %v437_v3 = vld [vmem:[%s1419_s7 + $0x1f8] sm:$0xff]  ;;  %817 = vmatprep.subr.mxu0 %v405_v2  ;;  %v436_v9 = vld [vmem:[%s1419_s7 + $0x1f0] sm:$0xff]  ;;  %v435_v13 = vld [vmem:[%s1419_s7 + $0x1e8] sm:$0xff] }
  0x8c   : > { %v266_v4 = vld [vmem:[#allocation6] sm:$0x3]  ;;  %852 = vmatprep.subr.mxu1 %v437_v3  ;;  %v280_v8 = vshrl.u32 %v269_v1, 7  ;;  %v388_v10 = vld [vmem:[%s1419_s7 + $0x70] sm:$0xff]  ;;  %v387_v14 = vld [vmem:[%s1419_s7 + $0x68] sm:$0xff] }
  0x8d   : > { %v389_v5 = vld [vmem:[%s1419_s7 + $0x78] sm:$0xff]  ;;  %v420_v11 = vld [vmem:[%s1419_s7 + $0x170] sm:$0xff]  ;;  %v419_v17 = vld [vmem:[%s1419_s7 + $0x168] sm:$0xff] }
  0x8e   : > { %v421_v6 = vld [vmem:[%s1419_s7 + $0x178] sm:$0xff]  ;;  %818 = vmatpush3.msra.mxu0 %v389_v5  ;;  %v281_v15 = vsub.s32 0, %v280_v8  ;;  %v288_v16 = vsub.s32 1, %v280_v8  ;;  %v402_v18 = vld [vmem:[%s1419_s7 + $0xe0] sm:$0xff]  ;;  %v400_v28 = vld [vmem:[%s1419_s7 + $0xd0] sm:$0xff] }
  0x8f   : > { %853 = vmatpush3.msra.mxu1 %v421_v6  ;;  %819 = vmatprep.subr.mxu0 %v404_v7  ;;  %v434_v19 = vld [vmem:[%s1419_s7 + $0x1e0] sm:$0xff]  ;;  %v401_v23 = vld [vmem:[%s1419_s7 + $0xd8] sm:$0xff]  ;;  %v432_v29 = vld [vmem:[%s1419_s7 + $0x1d0] sm:$0xff] }
  0x90   : > { %854 = vmatprep.subr.mxu1 %v436_v9  ;;  %820 = vmatpush3.msra.mxu0 %v388_v10  ;;  %v386_v20 = vld [vmem:[%s1419_s7 + $0x60] sm:$0xff]  ;;  %v282_v21 = vrot.slane %v266_v4, %v281_v15  ;;  %v433_v24 = vld [vmem:[%s1419_s7 + $0x1d8] sm:$0xff]  ;;  %v289_v26 = vrot.slane %v266_v4, %v288_v16  ;;  %v384_v30 = vld [vmem:[%s1419_s7 + $0x50] sm:$0xff]  ;;  %v270_v9 = vand.u32 127, %v269_v1 }
  0x91   : > { %855 = vmatpush3.msra.mxu1 %v420_v11  ;;  %821 = vmatprep.subr.mxu0 %v403_v12  ;;  %v418_v22 = vld [vmem:[%s1419_s7 + $0x160] sm:$0xff]  ;;  %v385_v25 = vld [vmem:[%s1419_s7 + $0x58] sm:$0xff]  ;;  %v416_v31 = vld [vmem:[%s1419_s7 + $0x150] sm:$0xff] }
  0x92   : > { %856 = vmatprep.subr.mxu1 %v435_v13  ;;  %822 = vmatpush3.msra.mxu0 %v387_v14  ;;  %v417_v27 = vld [vmem:[%s1419_s7 + $0x158] sm:$0xff]  ;;  %v399_v32 = vld [vmem:[%s1419_s7 + $0xc8] sm:$0xff]  ;;  %v398_v36 = vld [vmem:[%s1419_s7 + $0xc0] sm:$0xff]  ;;  %v271_v10 = vadd.s32 128, %v270_v9  ;;  %v272_v11 = vadd.s32 256, %v270_v9  ;;  %v273_v12 = vadd.s32 384, %v270_v9  ;;  %v274_v13 = vstv %s801_s19 }
  0x93   : > { %857 = vmatpush3.msra.mxu1 %v419_v17  ;;  %823 = vmatprep.subr.mxu0 %v402_v18  ;;  %v431_v33 = vld [vmem:[%s1419_s7 + $0x1c8] sm:$0xff]  ;;  %v430_v37 = vld [vmem:[%s1419_s7 + $0x1c0] sm:$0xff]  ;;  %v397_v40 = vld [vmem:[%s1419_s7 + $0xb8] sm:$0xff]  ;;  %v275_v14 = vadd.s32 %v274_v13, %v270_v9 }
  0x94   : > { %858 = vmatprep.subr.mxu1 %v434_v19  ;;  %284 = vbcast.lane.b32.xlu0 %v282_v21, 256  ;;  %v383_v34 = vld [vmem:[%s1419_s7 + $0x48] sm:$0xff]  ;;  %v382_v38 = vld [vmem:[%s1419_s7 + $0x40] sm:$0xff]  ;;  %v429_v41 = vld [vmem:[%s1419_s7 + $0x1b8] sm:$0xff]  ;;  %v276_v15 = vadd.s32 %v274_v13, %v271_v10  ;;  %v277_v16 = vadd.s32 %v274_v13, %v272_v11  ;;  %v278_v17 = vadd.s32 %v274_v13, %v273_v12  ;;  %v1227_v19 = vmov 0.0  }
  0x95   : > { %824 = vmatpush3.msra.mxu0 %v386_v20  ;;  %859 = vmatpush3.msra.mxu1 %v418_v22  ;;  %v415_v35 = vld [vmem:[%s1419_s7 + $0x148] sm:$0xff]  ;;  %v414_v39 = vld [vmem:[%s1419_s7 + $0x140] sm:$0xff]  ;;  %v381_v42 = vld [vmem:[%s1419_s7 + $0x38] sm:$0xff] }
  0x96   : > { %825 = vmatprep.subr.mxu0 %v401_v23  ;;  %860 = vmatprep.subr.mxu1 %v433_v24  ;;  %v413_v43 = vld [vmem:[%s1419_s7 + $0x138] sm:$0xff]  ;;  %v396_v44 = vld [vmem:[%s1419_s7 + $0xb0] sm:$0xff]  ;;  %v395_v48 = vld [vmem:[%s1419_s7 + $0xa8] sm:$0xff] }
  0x97   : > { %826 = vmatpush3.msra.mxu0 %v385_v25  ;;  %861 = vmatpush3.msra.mxu1 %v417_v27  ;;  %v428_v45 = vld [vmem:[%s1419_s7 + $0x1b0] sm:$0xff]  ;;  %v427_v49 = vld [vmem:[%s1419_s7 + $0x1a8] sm:$0xff]  ;;  %v394_v52 = vld [vmem:[%s1419_s7 + $0xa0] sm:$0xff] }
  0x98   : > { %827 = vmatprep.subr.mxu0 %v400_v28  ;;  %291 = vbcast.lane.b32.xlu0 %v289_v26, 256  ;;  %v380_v46 = vld [vmem:[%s1419_s7 + $0x30] sm:$0xff]  ;;  %v379_v50 = vld [vmem:[%s1419_s7 + $0x28] sm:$0xff]  ;;  %v426_v53 = vld [vmem:[%s1419_s7 + $0x1a0] sm:$0xff] }
  0x99   : > { %862 = vmatprep.subr.mxu1 %v432_v29  ;;  %828 = vmatpush3.msra.mxu0 %v384_v30  ;;  %v412_v47 = vld [vmem:[%s1419_s7 + $0x130] sm:$0xff]  ;;  %v411_v51 = vld [vmem:[%s1419_s7 + $0x128] sm:$0xff]  ;;  %v378_v54 = vld [vmem:[%s1419_s7 + $0x20] sm:$0xff] }
  0x9a   : > { %863 = vmatpush3.msra.mxu1 %v416_v31  ;;  %829 = vmatprep.subr.mxu0 %v399_v32  ;;  %v410_v55 = vld [vmem:[%s1419_s7 + $0x120] sm:$0xff]  ;;  %v393_v56 = vld [vmem:[%s1419_s7 + $0x98] sm:$0xff]  ;;  %v392_v60 = vld [vmem:[%s1419_s7 + $0x90] sm:$0xff] }
  0x9b   : > { %864 = vmatprep.subr.mxu1 %v431_v33  ;;  %830 = vmatpush3.msra.mxu0 %v383_v34  ;;  %v425_v57 = vld [vmem:[%s1419_s7 + $0x198] sm:$0xff]  ;;  %v424_v61 = vld [vmem:[%s1419_s7 + $0x190] sm:$0xff]  ;;  %v391_v0 = vld [vmem:[%s1419_s7 + $0x88] sm:$0xff] }
  0x9c   : > { %865 = vmatpush3.msra.mxu1 %v415_v35  ;;  %831 = vmatprep.subr.mxu0 %v398_v36  ;;  %v377_v58 = vld [vmem:[%s1419_s7 + $0x18] sm:$0xff]  ;;  %v376_v62 = vld [vmem:[%s1419_s7 + $0x10] sm:$0xff]  ;;  %v423_v2 = vld [vmem:[%s1419_s7 + $0x188] sm:$0xff] }
  0x9d   : > { %866 = vmatprep.subr.mxu1 %v430_v37  ;;  %832 = vmatpush3.msra.mxu0 %v382_v38  ;;  %v409_v59 = vld [vmem:[%s1419_s7 + $0x118] sm:$0xff]  ;;  %v408_v63 = vld [vmem:[%s1419_s7 + $0x110] sm:$0xff]  ;;  %v375_v3 = vld [vmem:[%s1419_s7 + $0x8] sm:$0xff] }
  0x9e   : > { %867 = vmatpush3.msra.mxu1 %v414_v39  ;;  %833 = vmatprep.subr.mxu0 %v397_v40  ;;  %v407_v4 = vld [vmem:[%s1419_s7 + $0x108] sm:$0xff]  ;;  %v390_v5 = vld [vmem:[%s1419_s7 + $0x80] sm:$0xff] }
  0x9f   : > { %868 = vmatprep.subr.mxu1 %v429_v41  ;;  %834 = vmatpush3.msra.mxu0 %v381_v42  ;;  %v422_v6 = vld [vmem:[%s1419_s7 + $0x180] sm:$0xff] }
  0xa0   : > { %869 = vmatpush3.msra.mxu1 %v413_v43  ;;  %835 = vmatprep.subr.mxu0 %v396_v44  ;;  %v374_v7 = vld [vmem:[%s1419_s7] sm:$0xff] }
  0xa1   : > { %870 = vmatprep.subr.mxu1 %v428_v45  ;;  %836 = vmatpush3.msra.mxu0 %v380_v46  ;;  %v406_v8 = vld [vmem:[%s1419_s7 + $0x100] sm:$0xff] }
  0xa2   : > { %871 = vmatpush3.msra.mxu1 %v412_v47  ;;  %837 = vmatprep.subr.mxu0 %v395_v48 }
  0xa3   : > { %872 = vmatprep.subr.mxu1 %v427_v49  ;;  %838 = vmatpush3.msra.mxu0 %v379_v50 }
  0xa4   : > { %873 = vmatpush3.msra.mxu1 %v411_v51  ;;  %839 = vmatprep.subr.mxu0 %v394_v52 }
  0xa5   : > { %874 = vmatprep.subr.mxu1 %v426_v53  ;;  %840 = vmatpush3.msra.mxu0 %v378_v54 }
  0xa6   : > { %875 = vmatpush3.msra.mxu1 %v410_v55  ;;  %841 = vmatprep.subr.mxu0 %v393_v56 }
  0xa7   : > { %876 = vmatprep.subr.mxu1 %v425_v57  ;;  %842 = vmatpush3.msra.mxu0 %v377_v58 }
  0xa8   : > { %877 = vmatpush3.msra.mxu1 %v409_v59  ;;  %843 = vmatprep.subr.mxu0 %v392_v60 }
  0xa9   : > { %878 = vmatprep.subr.mxu1 %v424_v61  ;;  %844 = vmatpush3.msra.mxu0 %v376_v62 }
  0xaa   : > { %879 = vmatpush3.msra.mxu1 %v408_v63  ;;  %845 = vmatprep.subr.mxu0 %v391_v0 }
  0xab   : > { %880 = vmatprep.subr.mxu1 %v423_v2  ;;  %846 = vmatpush3.msra.mxu0 %v375_v3 }
  0xac   : > { %881 = vmatpush3.msra.mxu1 %v407_v4  ;;  %847 = vmatprep.subr.mxu0 %v390_v5 }
  0xad   : > { %882 = vmatprep.subr.mxu1 %v422_v6  ;;  %848 = vmatpush3.msra.mxu0 %v374_v7 }
  0xae   : > { %883 = vmatpush3.msra.mxu1 %v406_v8 }
 0x106   : > { %v285_v18 = vpop.permute.xlu0 %284 }
 0x107   : > { %vm293_vm0 = vcmp.eq.s32.totalorder %v285_v18, %v275_v14  ;;  %vm294_vm1 = vcmp.eq.s32.totalorder %v285_v18, %v276_v15  ;;  %vm295_vm2 = vcmp.eq.s32.totalorder %v285_v18, %v277_v16  ;;  %vm296_vm3 = vcmp.eq.s32.totalorder %v285_v18, %v278_v17 }
 0x108   : > { %v802_v20 = vsel %vm293_vm0, 1.0, %v1227_v19  ;;  %v803_v21 = vsel %vm294_vm1, 1.0, %v1227_v19  ;;  %v804_v22 = vsel %vm295_vm2, 1.0, %v1227_v19  ;;  %v805_v23 = vsel %vm296_vm3, 1.0, %v1227_v19 }
 0x109   : > { %v317_v1 = vrot.slane %v802_v20, 4  ;;  %v329_v24 = vrot.slane %v804_v22, 4  ;;  %v323_v25 = vrot.slane %v803_v21, 4  ;;  %v335_v26 = vrot.slane %v805_v23, 4 }
 0x10a   : > { %v292_v27 = vpop.permute.xlu0 %291 }
 0x10b   : > { %v318_v28 = vadd.f32 %v802_v20, %v317_v1  ;;  %v330_v29 = vadd.f32 %v804_v22, %v329_v24  ;;  %vm297_vm4 = vcmp.eq.s32.totalorder %v292_v27, %v275_v14  ;;  %vm298_vm5 = vcmp.eq.s32.totalorder %v292_v27, %v276_v15 }
 0x10c   : > { %vm299_vm6 = vcmp.eq.s32.totalorder %v292_v27, %v277_v16  ;;  %vm300_vm7 = vcmp.eq.s32.totalorder %v292_v27, %v278_v17  ;;  %v806_v30 = vsel %vm297_vm4, 1.0, %v1227_v19  ;;  %v807_v31 = vsel %vm298_vm5, 1.0, %v1227_v19 }
 0x10d   : > { %v808_v32 = vsel %vm299_vm6, 1.0, %v1227_v19  ;;  %v809_v33 = vsel %vm300_vm7, 1.0, %v1227_v19  ;;  %v341_v34 = vrot.slane %v806_v30, 4  ;;  %v347_v35 = vrot.slane %v807_v31, 4 }
 0x10e   : > { %v353_v36 = vrot.slane %v808_v32, 4  ;;  %v359_v37 = vrot.slane %v809_v33, 4  ;;  %v324_v38 = vadd.f32 %v803_v21, %v323_v25  ;;  %v336_v39 = vadd.f32 %v805_v23, %v335_v26  ;;  %v373_v23 = vld [vmem:[#allocation2] sm:$0x3] }
 0x10f   : > { %v342_v40 = vadd.f32 %v806_v30, %v341_v34  ;;  %v348_v41 = vadd.f32 %v807_v31, %v347_v35  ;;  %v319_v42 = vrot.slane %v318_v28, 2  ;;  %v331_v43 = vrot.slane %v330_v29, 2 }
 0x110   : > { %v354_v44 = vadd.f32 %v808_v32, %v353_v36  ;;  %v360_v45 = vadd.f32 %v809_v33, %v359_v37  ;;  %v325_v46 = vrot.slane %v324_v38, 2  ;;  %v337_v47 = vrot.slane %v336_v39, 2 }
 0x111   : > { %v343_v48 = vrot.slane %v342_v40, 2  ;;  %v349_v49 = vrot.slane %v348_v41, 2  ;;  %v320_v50 = vadd.f32 %v319_v42, %v318_v28  ;;  %v332_v51 = vadd.f32 %v331_v43, %v330_v29 }
 0x112   : > { %v355_v52 = vrot.slane %v354_v44, 2  ;;  %v361_v53 = vrot.slane %v360_v45, 2  ;;  %v326_v54 = vadd.f32 %v325_v46, %v324_v38  ;;  %v338_v55 = vadd.f32 %v337_v47, %v336_v39 }
 0x113   : > { %v344_v56 = vadd.f32 %v343_v48, %v342_v40  ;;  %v350_v57 = vadd.f32 %v349_v49, %v348_v41  ;;  %v321_v58 = vrot.slane %v320_v50, 1  ;;  %v333_v59 = vrot.slane %v332_v51, 1 }
 0x114   : > { %v356_v60 = vadd.f32 %v355_v52, %v354_v44  ;;  %v327_v61 = vrot.slane %v326_v54, 1  ;;  %v339_v62 = vrot.slane %v338_v55, 1  ;;  %v362_v63 = vadd.f32 %v361_v53, %v360_v45 }
 0x115   : > { %v351_v0 = vrot.slane %v350_v57, 1  ;;  %v345_v2 = vrot.slane %v344_v56, 1  ;;  %v322_v7 = vadd.f32 %v321_v58, %v320_v50  ;;  %v334_v11 = vadd.f32 %v333_v59, %v332_v51 }
 0x116   : > { %v363_v3 = vrot.slane %v362_v63, 1  ;;  %v357_v4 = vrot.slane %v356_v60, 1  ;;  %v328_v5 = vadd.f32 %v327_v61, %v326_v54  ;;  %v340_v9 = vadd.f32 %v339_v62, %v338_v55 }
 0x117   : > { %v352_v6 = vadd.f32 %v351_v0, %v350_v57  ;;  %v346_v8 = vadd.f32 %v345_v2, %v344_v56 }
 0x118   : > { %v364_v10 = vadd.f32 %v363_v3, %v362_v63  ;;  %v358_v12 = vadd.f32 %v357_v4, %v356_v60 }
 0x119   : > { %v448_v13 = vsel %vm446_vm8, %v352_v6, %v328_v5  ;;  %v447_v14 = vsel %vm446_vm8, %v346_v8, %v322_v7 }
 0x11a   : > { %519 = vmatprep.mubr.f32.mxu0 %v448_v13  ;;  %v450_v15 = vsel %vm446_vm8, %v364_v10, %v340_v9  ;;  %v449_v16 = vsel %vm446_vm8, %v358_v12, %v334_v11 }
 0x11b   : > { %589 = vmatprep.mubr.f32.mxu1 %v450_v15  ;;  %520 = vmatmul.mubr.f32.vlgmr.msra.gmra.mxu0 %v447_v14 }
 0x11c   : > { %590 = vmatmul.mubr.f32.vlgmr.msra.gmra.mxu1 %v449_v16 }
 0x1db   : > { %v849_v17 = vpop.f32.mrf.mxu0 }
 0x1dc   : > { %v884_v18 = vpop.f32.mrf.mxu1 }
 0x1dd   : > { %v850_v19 = vpop.f32.mrf.mxu0 }
 0x1de   : > { %v851_v20 = vadd.f32 %v850_v19, %v849_v17  ;;  %v885_v21 = vpop.f32.mrf.mxu1 }
 0x1df   : > { %v886_v22 = vadd.f32 %v885_v21, %v884_v18 }
 0x1e1   : > { %v592_v1 = vadd.f32 %v886_v22, %v851_v20 }
 0x1e3   : > { %v595_v24 = vadd.f32 %v592_v1, %v373_v23 }
 0x1e5   : > { %596 = vst [vmem:[#allocation2] sm:$0x3] %v595_v24 }
 0x1e6 PF: > { %p810_p5 = scmp.ne.s32.totalorder %s1294_s1, 9 }
 0x1e8   : > { %600 = sbr.rel (%p810_p5) target bundleno = 722 (0x2d2), region = 64 }
 0x1ed   : > { %v618_v25 = vld [vmem:[#allocation11 + $0x78] sm:$0xff]  ;;  %v1228_v26 = vmov 0.0   ;;  %v617_v27 = vld [vmem:[#allocation11 + $0x70] sm:$0xff]  ;;  %vm1229_vm9 = vmmov 0   ;;  %v616_v28 = vld [vmem:[#allocation11 + $0x68] sm:$0xff] }
 0x1ee   : > { %904 = vmatprep.subr.mxu0 %v1228_v26  ;;  %936 = vmatprep.mubr.msk.f32.mxu0 %vm1229_vm9, %v1228_v26  ;;  %v615_v29 = vld [vmem:[#allocation11 + $0x60] sm:$0xff]  ;;  %v614_v30 = vld [vmem:[#allocation11 + $0x58] sm:$0xff]  ;;  %v613_v31 = vld [vmem:[#allocation11 + $0x50] sm:$0xff] }
 0x1ef   : > { %905 = vmatpush3.msra.mxu0 %v618_v25  ;;  %v612_v32 = vld [vmem:[#allocation11 + $0x48] sm:$0xff]  ;;  %v611_v33 = vld [vmem:[#allocation11 + $0x40] sm:$0xff]  ;;  %v610_v34 = vld [vmem:[#allocation11 + $0x38] sm:$0xff] }
 0x1f0   : > { %906 = vmatprep.subr.mxu0 %v1228_v26  ;;  %v609_v35 = vld [vmem:[#allocation11 + $0x30] sm:$0xff]  ;;  %v608_v36 = vld [vmem:[#allocation11 + $0x28] sm:$0xff]  ;;  %v607_v37 = vld [vmem:[#allocation11 + $0x20] sm:$0xff] }
 0x1f1   : > { %907 = vmatpush3.msra.mxu0 %v617_v27  ;;  %v606_v38 = vld [vmem:[#allocation11 + $0x18] sm:$0xff]  ;;  %v605_v39 = vld [vmem:[#allocation11 + $0x10] sm:$0xff]  ;;  %v604_v41 = vld [vmem:[#allocation11 + $0x8] sm:$0xff] }
 0x1f2   : > { %908 = vmatprep.subr.mxu0 %v1228_v26  ;;  %v601_v40 = vld [vmem:[#allocation2] sm:$0x3]  ;;  %v603_v42 = vld [vmem:[#allocation11] sm:$0xff] }
 0x1f3   : > { %909 = vmatpush3.msra.mxu0 %v616_v28  ;;  %v602_v43 = vmul.f32 0.125, %v601_v40  ;;  %v811_v44 = vld [vmem:[#allocation12] ss:$0 sm:$0xff] }
 0x1f4   : > { %910 = vmatprep.subr.mxu0 %v1228_v26 }
 0x1f5   : > { %911 = vmatpush3.msra.mxu0 %v615_v29 }
 0x1f6   : > { %912 = vmatprep.subr.mxu0 %v1228_v26 }
 0x1f7   : > { %913 = vmatpush3.msra.mxu0 %v614_v30 }
 0x1f8   : > { %914 = vmatprep.subr.mxu0 %v1228_v26 }
 0x1f9   : > { %915 = vmatpush3.msra.mxu0 %v613_v31 }
 0x1fa   : > { %916 = vmatprep.subr.mxu0 %v1228_v26 }
 0x1fb   : > { %917 = vmatpush3.msra.mxu0 %v612_v32 }
 0x1fc   : > { %918 = vmatprep.subr.mxu0 %v1228_v26 }
 0x1fd   : > { %919 = vmatpush3.msra.mxu0 %v611_v33 }
 0x1fe   : > { %920 = vmatprep.subr.mxu0 %v1228_v26 }
 0x1ff   : > { %921 = vmatpush3.msra.mxu0 %v610_v34 }
 0x200   : > { %922 = vmatprep.subr.mxu0 %v1228_v26 }
 0x201   : > { %923 = vmatpush3.msra.mxu0 %v609_v35 }
 0x202   : > { %924 = vmatprep.subr.mxu0 %v1228_v26 }
 0x203   : > { %925 = vmatpush3.msra.mxu0 %v608_v36 }
 0x204   : > { %926 = vmatprep.subr.mxu0 %v1228_v26 }
 0x205   : > { %927 = vmatpush3.msra.mxu0 %v607_v37 }
 0x206   : > { %928 = vmatprep.subr.mxu0 %v1228_v26 }
 0x207   : > { %929 = vmatpush3.msra.mxu0 %v606_v38 }
 0x208   : > { %930 = vmatprep.subr.mxu0 %v1228_v26 }
 0x209   : > { %931 = vmatpush3.msra.mxu0 %v605_v39 }
 0x20a   : > { %932 = vmatprep.subr.mxu0 %v1228_v26 }
 0x20b   : > { %933 = vmatpush3.msra.mxu0 %v604_v41 }
 0x20c   : > { %934 = vmatprep.subr.mxu0 %v1228_v26 }
 0x20d   : > { %935 = vmatpush3.msra.mxu0 %v603_v42 }
 0x20e   : > { %937 = vmatmul.mubr.f32.vlgmr.msra.gmra.mxu0 %v602_v43 }
 0x2ce   : > { %v692_v45 = vpop.f32.mrf.mxu0 }
 0x2cf   : > { %v693_v46 = vadd.f32 %v811_v44, %v692_v45 }
 0x2d0   : > { %v938_v47 = vpop.f32.mrf.mxu0 }
 0x2d1   : > { %696 = vst [vmem:[#allocation14] sm:$0x3] %v693_v46 }
 0x2d2 PF: > { %p982_p0 = scmp.eq.s32.totalorder %s1294_s1, 9  ;;  %s1230_s20 = smov [#allocation14]  }
 0x2d3   : > { %s704_s25 = sshll.u32 %s1230_s20, 4  ;;  %s705_s25 = int_to_ptr.vmem [resolvable:$true] %s704_s25 }
 0x2d4   : > { %s1141_s11 = scalar_lea.vmem %s705_s25, 32  ;;  %p1148_p10 = scmp.lt.s32.totalorder %s705_s25, %s705_s25 }
 0x2d5   : > { %p1142_p2 = scmp.ne.s32.totalorder %s705_s25, %s1141_s11  ;;  %p1149_p13 = scmp.lt.s32.totalorder %s1141_s11, %s1141_s11 }
 0x2d7   : > { %p1143_p9 = pnand %p1142_p2, %p982_p0  ;;  %p1150_p6 = por %p1149_p13, %p1148_p10 }
 0x2d9   : > { %p1144_p11 = pneg %p1143_p9 }
 0x2db   : > { %p1151_p8 = pnand %p1150_p6, %p1144_p11 }
 0x2dd   : > { %1154 = shalt.err (!%p1151_p8)
}
 0x2de   : > { %956 = dma.vmem_to_hbm [thread:$0]  (%p982_p0), %s705_s25, 32, %s1535_s6, [#allocation8]  }
 0x2df   : > { %1200 = dma.done.wait (%p982_p0), [#allocation8], 32  }
 0x2e0   : > { %1202 = vsyncadd (%p982_p0), [#allocation8], 4294967264 }
 0x2e1 PF: > { %p24_p12 = scmp.ge.s32.totalorder %s1291_s0, 12   ;;  %s1554_s26 = smov %s1209_s27 }
 0x2e2   : > { %s1555_s27 = smov %s1213_s28  ;;  %s1556_s28 = smov %s1320_s14 }
 0x2e3   : > { %s1557_s29 = smov %s1291_s0  ;;  %26 = sbr.rel (!%p24_p12) target bundleno = 12 (0xc), region = 98 }
 0x2e8   :  { %717 = vsyncpa [#allocation7], 1 }
 0x2e9   :  { %719 = vsyncpa [#allocation7 + $0x1], 1 }
 0x2ea   :  { %720 = vsyncpa [#allocation10], 1 }
 0x2eb   :  { %722 = vsyncpa [#allocation10 + $0x1], 1 }
 0x2ec   :  { %723 = vsyncpa [#allocation13], 1 }
 0x2ed   :  { %724 = vsyncpa [#allocation8], 1 }
 0x2ee   :  { %726 = vsyncpa [#allocation8 + $0x1], 1 }

</bundles_post_ra>
